<compile_context>
chip_gen: v5e
topology: v5e:2x2
jax: 0.10.0
libtpu: 0.0.40
codegen_flags: <defaults>
</compile_context>

<pallas_src>
import functools

import jax
import jax.numpy as jnp
from jax.experimental import pallas as pl
from jax.experimental.pallas import tpu as pltpu

LANE = 128
TK_MAX = 512   # matmul K (contraction) tile for large Cin*Kh*Kw


def _round_up(x, m):
    return ((x + m - 1) // m) * m


# ---------------------------------------------------------------- kernels ----
def conv_stats_kernel_1k(a_ref, w_ref, o_ref, psum_ref, psq_ref):
    """Single-K-tile matmul + fused per-tile BN-stat reduction. grid = (M tiles,)."""
    r = jnp.dot(a_ref[...], w_ref[...], preferred_element_type=jnp.float32)
    o_ref[...] = r
    # per-M-tile partial stats (combined by a tiny XLA sum in the wrapper),
    # so the M axis stays "parallel" and the slab is not re-read for stats.
    psum_ref[...] = jnp.sum(r, axis=0, keepdims=True)[None]
    psq_ref[...] = jnp.sum(r * r, axis=0, keepdims=True)[None]


def conv_stats_kernel_nk(a_ref, w_ref, o_ref, psum_ref, psq_ref, acc_ref):
    """K-tiled matmul with f32 VMEM accumulator + fused BN-stat reduction.

    grid = (M tiles [parallel], K tiles [arbitrary, reduction last]).
    Weights are already binarized (alpha * sign(w)) by the wrapper.
    """
    k = pl.program_id(1)

    @pl.when(k == 0)
    def _():
        acc_ref[...] = jnp.zeros_like(acc_ref)

    acc_ref[...] += jnp.dot(a_ref[...], w_ref[...],
                            preferred_element_type=jnp.float32)

    @pl.when(k == pl.num_programs(1) - 1)
    def _():
        r = acc_ref[...]
        o_ref[...] = r
        psum_ref[...] = jnp.sum(r, axis=0, keepdims=True)[None]
        psq_ref[...] = jnp.sum(r * r, axis=0, keepdims=True)[None]


def bn_prelu_kernel(a_ref, x_ref, scale_ref, shift_ref, o_ref):
    y = x_ref[...] * scale_ref[...] + shift_ref[...]
    a = a_ref[0]
    o_ref[...] = jnp.where(y >= 0, y, a * y)


# ---------------------------------------------------------------- wrapper ----
@functools.partial(jax.jit, static_argnames=("stride", "padding", "eps"))
def binary_conv2d(x, weight, alpha, gamma, beta, prelu_a,
                  *, stride=1, padding=1, eps=1e-5):
    N, Cin, H, W = x.shape
    Cout, _, Kh, Kw = weight.shape
    Ho = (H + 2 * padding - Kh) // stride + 1
    Wo = (W + 2 * padding - Kw) // stride + 1

    M = N * Ho * Wo
    Kdim = Cin * Kh * Kw
    Coutp = _round_up(Cout, LANE)

    # Row tiling: matmul tile (<=256 rows), streaming tile grown up to 1024 rows.
    TM_MM = min(256, _round_up(M, 8))
    Mp = _round_up(M, TM_MM)
    TM_EW = TM_MM
    while TM_EW * 2 <= 1024 and Mp % (TM_EW * 2) == 0:
        TM_EW *= 2

    # K tiling: full-K block when small, otherwise 512-wide K tiles.
    if Kdim <= TK_MAX:
        TK, Kp = Kdim, Kdim
    else:
        TK = TK_MAX
        Kp = _round_up(Kdim, TK)
    n_k = Kp // TK
    n_m = Mp // TM_MM

    # --- hoisted binarization (once, outside the kernel) ----------------------
    # DualRateAlphaFunction forward assumed: binary_weight = alpha * sign(w).
    # TODO(synk): DualRateAlphaFunction source not given; if it maps 0 -> +1
    # (common in binary nets) replace jnp.sign with jnp.where(w >= 0, 1, -1).
    bw = alpha[0] * jnp.sign(weight.astype(jnp.float32))
    # K ordering (kh, kw, cin) must match the patch concat order below.
    w_flat = bw.transpose(2, 3, 1, 0).reshape(Kdim, Cout)
    w_pad = jnp.pad(w_flat, ((0, Kp - Kdim), (0, Coutp - Cout)))

    # --- glue: im2col (pure layout work; single small NHWC transpose) ---------
    x_nhwc = jnp.transpose(x, (0, 2, 3, 1)).astype(jnp.float32)
    xp = jnp.pad(x_nhwc, ((0, 0), (padding, padding), (padding, padding), (0, 0)))
    cols = []
    for kh in range(Kh):
        for kw in range(Kw):
            cols.append(xp[:, kh:kh + stride * Ho:stride,
                              kw:kw + stride * Wo:stride, :])
    patches = jnp.concatenate(cols, axis=-1).reshape(M, Kdim)  # (M, Kh*Kw*Cin)
    patches_p = jnp.pad(patches, ((0, Mp - M), (0, Kp - Kdim)))
    # TODO(synk): folding the kh/kw offsets into the matmul's K grid axis (reading
    # shifted windows of xp via index_map) would avoid materializing this 9x slab.

    # --- kernel 1: binary conv matmul + fused BN batch statistics -------------
    out_shapes = (jax.ShapeDtypeStruct((Mp, Coutp), jnp.float32),
                  jax.ShapeDtypeStruct((n_m, 1, Coutp), jnp.float32),
                  jax.ShapeDtypeStruct((n_m, 1, Coutp), jnp.float32))
    cost = pl.CostEstimate(
        flops=2 * Mp * Kp * Coutp,
        transcendentals=0,
        bytes_accessed=4 * (Mp * Kp + Kp * Coutp + 2 * Mp * Coutp))

    if n_k == 1:
        conv_out, psums, psqs = pl.pallas_call(
            conv_stats_kernel_1k,
            out_shape=out_shapes,
            grid=(n_m,),
            in_specs=[
                pl.BlockSpec((TM_MM, TK), lambda i: (i, 0)),      # patches tile
                pl.BlockSpec((TK, Coutp), lambda i: (0, 0)),      # full weight
            ],
            out_specs=(
                pl.BlockSpec((TM_MM, Coutp), lambda i: (i, 0)),   # conv output
                pl.BlockSpec((1, 1, Coutp), lambda i: (i, 0, 0)),  # partial sum
                pl.BlockSpec((1, 1, Coutp), lambda i: (i, 0, 0)),  # partial sumsq
            ),
            compiler_params=pltpu.CompilerParams(
                dimension_semantics=("parallel",),
                vmem_limit_bytes=32 * 1024 * 1024),
            cost_estimate=cost,
        )(patches_p, w_pad)
    else:
        conv_out, psums, psqs = pl.pallas_call(
            conv_stats_kernel_nk,
            out_shape=out_shapes,
            grid=(n_m, n_k),
            in_specs=[
                pl.BlockSpec((TM_MM, TK), lambda i, k: (i, k)),      # patches tile
                pl.BlockSpec((TK, Coutp), lambda i, k: (k, 0)),      # weight K-tile
            ],
            out_specs=(
                pl.BlockSpec((TM_MM, Coutp), lambda i, k: (i, 0)),   # conv output
                pl.BlockSpec((1, 1, Coutp), lambda i, k: (i, 0, 0)),  # partial sum
                pl.BlockSpec((1, 1, Coutp), lambda i, k: (i, 0, 0)),  # partial sumsq
            ),
            scratch_shapes=[pltpu.VMEM((TM_MM, Coutp), jnp.float32)],
            compiler_params=pltpu.CompilerParams(
                dimension_semantics=("parallel", "arbitrary"),
                vmem_limit_bytes=32 * 1024 * 1024),
            cost_estimate=cost,
        )(patches_p, w_pad)

    # --- tiny combine + BN scale/shift (training-mode batch stats) ------------
    # Padded rows/channels are exactly zero, so dividing by the real M is exact.
    sums = jnp.sum(psums[:, 0, :], axis=0, keepdims=True)        # (1, Coutp)
    sqs = jnp.sum(psqs[:, 0, :], axis=0, keepdims=True)
    mean = sums / M
    var = jnp.maximum(sqs / M - mean * mean, 0.0)                # biased, clamped
    gamma_p = jnp.pad(gamma.astype(jnp.float32), (0, Coutp - Cout)).reshape(1, Coutp)
    beta_p = jnp.pad(beta.astype(jnp.float32), (0, Coutp - Cout)).reshape(1, Coutp)
    scale = gamma_p / jnp.sqrt(var + eps)
    shift = beta_p - mean * scale

    # --- kernel 2: fused BN-normalize + PReLU (streaming, lane-dense) ---------
    out_flat = pl.pallas_call(
        bn_prelu_kernel,
        out_shape=jax.ShapeDtypeStruct((Mp, Coutp), jnp.float32),
        grid=(Mp // TM_EW,),
        in_specs=[
            pl.BlockSpec(memory_space=pltpu.MemorySpace.SMEM),   # prelu a (1,)
            pl.BlockSpec((TM_EW, Coutp), lambda i: (i, 0)),
            pl.BlockSpec((1, Coutp), lambda i: (0, 0)),
            pl.BlockSpec((1, Coutp), lambda i: (0, 0)),
        ],
        out_specs=pl.BlockSpec((TM_EW, Coutp), lambda i: (i, 0)),
        compiler_params=pltpu.CompilerParams(
            dimension_semantics=("parallel",),
            vmem_limit_bytes=32 * 1024 * 1024),
    )(prelu_a.astype(jnp.float32), conv_out, scale, shift)

    # back to NCHW (interface fidelity; a stacked NHWC network could skip this)
    out = out_flat[:M, :Cout].reshape(N, Ho, Wo, Cout).transpose(0, 3, 1, 2)
    return out


# -------------------------------------------------------- pure-JAX reference --
def _reference(x, weight, alpha, gamma, beta, prelu_a, *, stride, padding, eps=1e-5):
    bw = alpha[0] * jnp.sign(weight)
    y = jax.lax.conv_general_dilated(
        x, bw, window_strides=(stride, stride),
        padding=[(padding, padding), (padding, padding)],
        dimension_numbers=("NCHW", "OIHW", "NCHW"))
    mean = jnp.mean(y, axis=(0, 2, 3), keepdims=True)
    var = jnp.mean((y - mean) ** 2, axis=(0, 2, 3), keepdims=True)
    yn = (y - mean) / jnp.sqrt(var + eps)
    yn = yn * gamma.reshape(1, -1, 1, 1) + beta.reshape(1, -1, 1, 1)
    return jnp.where(yn >= 0, yn, prelu_a[0] * yn)


# ------------------------------------------------------------------- main ----
if __name__ == "__main__":
    key = jax.random.PRNGKey(0)
    k_x, k_w = jax.random.split(key)

    N, Cin, H, W = 2, 4, 16, 16
    Cout, Ksz = 8, 3

    x = jax.random.normal(k_x, (N, Cin, H, W), dtype=jnp.float32)
    weight = jax.random.normal(k_w, (Cout, Cin, Ksz, Ksz), dtype=jnp.float32) * 0.1

    # deterministic module parameters (as in __init__)
    alpha = jnp.full((1,), 0.5, dtype=jnp.float32)       # nn.Parameter(ones(1)*0.5)
    gamma = jnp.ones((Cout,), dtype=jnp.float32)         # BatchNorm2d weight
    beta = jnp.zeros((Cout,), dtype=jnp.float32)         # BatchNorm2d bias
    prelu_a = jnp.full((1,), 0.25, dtype=jnp.float32)    # PReLU default init

    out = binary_conv2d(x, weight, alpha, gamma, beta, prelu_a,
                        stride=1, padding=1)
    jax.block_until_ready(out)
    assert out.shape == (N, Cout, H, W), out.shape

    ref = _reference(x, weight, alpha, gamma, beta, prelu_a, stride=1, padding=1)
    err = float(jnp.max(jnp.abs(out - ref)))
    assert err < 1e-3, f"max abs error vs reference: {err}"

    print("KERNEL_OK")
</pallas_src>

<mosaic_0001>
module attributes {stable_mosaic.version = 11 : i64} {
  func.func @conv_stats_kernel_1k(%arg0: i32, %arg1: memref<256x36xf32, #tpu.memory_space<vmem>>, %arg2: memref<36x128xf32, #tpu.memory_space<vmem>>, %arg3: memref<256x128xf32, #tpu.memory_space<vmem>>, %arg4: memref<1x1x128xf32, #tpu.memory_space<vmem>>, %arg5: memref<1x1x128xf32, #tpu.memory_space<vmem>>) attributes {dimension_semantics = [#tpu.dimension_semantics<parallel>], iteration_bounds = array<i64: 2>, scalar_prefetch = 0 : i64, scratch_operands = 0 : i64, tpu.core_type = #tpu.core_type<tc>, window_params = [{transform_indices = @transform_0, window_bounds = array<i64: 256, 36>}, {pipeline_mode = #tpu.pipeline_mode<synchronous>, transform_indices = @transform_1, window_bounds = array<i64: 36, 128>}, {transform_indices = @transform_2, window_bounds = array<i64: 256, 128>}, {transform_indices = @transform_3, window_bounds = array<i64: 1, 1, 128>}, {transform_indices = @transform_4, window_bounds = array<i64: 1, 1, 128>}]} {
    %c0 = arith.constant 0 : index
    %c0_0 = arith.constant 0 : index
    %0 = vector.load %arg1[%c0, %c0_0] : memref<256x36xf32, #tpu.memory_space<vmem>>, vector<256x36xf32>
    %c0_1 = arith.constant 0 : index
    %c0_2 = arith.constant 0 : index
    %1 = vector.load %arg2[%c0_1, %c0_2] : memref<36x128xf32, #tpu.memory_space<vmem>>, vector<36x128xf32>
    %cst = arith.constant dense<0.000000e+00> : vector<256x128xf32>
    %2 = tpu.matmul %0, %1, %cst {dimension_numbers = #tpu.dot_dimension_numbers<[1], [0], [0], [1], [0, 0, 1, 1], [], []>} : vector<256x36xf32>, vector<36x128xf32>, vector<256x128xf32> -> vector<256x128xf32>
    %c0_3 = arith.constant 0 : index
    %c0_4 = arith.constant 0 : index
    %3 = vector.load %arg3[%c0_3, %c0_4] : memref<256x128xf32, #tpu.memory_space<vmem>>, vector<256x128xf32>
    tpu.vector_store %arg3[%c0_3, %c0_4], %2 {strides = array<i32>} : memref<256x128xf32, #tpu.memory_space<vmem>>, vector<256x128xf32>,
    %cst_5 = arith.constant dense<0.000000e+00> : vector<128xf32>
    %4 = vector.multi_reduction <add>, %2, %cst_5 [0] : vector<256x128xf32> to vector<128xf32>
    %5 = vector.shape_cast %4 : vector<128xf32> to vector<1x128xf32>
    %6 = vector.shape_cast %5 : vector<1x128xf32> to vector<1x1x128xf32>
    %c0_6 = arith.constant 0 : index
    %c0_7 = arith.constant 0 : index
    %c0_8 = arith.constant 0 : index
    %7 = vector.load %arg4[%c0_6, %c0_7, %c0_8] : memref<1x1x128xf32, #tpu.memory_space<vmem>>, vector<1x1x128xf32>
    tpu.vector_store %arg4[%c0_6, %c0_7, %c0_8], %6 {strides = array<i32>} : memref<1x1x128xf32, #tpu.memory_space<vmem>>, vector<1x1x128xf32>,
    %8 = arith.mulf %2, %2 : vector<256x128xf32>
    %cst_9 = arith.constant dense<0.000000e+00> : vector<128xf32>
    %9 = vector.multi_reduction <add>, %8, %cst_9 [0] : vector<256x128xf32> to vector<128xf32>
    %10 = vector.shape_cast %9 : vector<128xf32> to vector<1x128xf32>
    %11 = vector.shape_cast %10 : vector<1x128xf32> to vector<1x1x128xf32>
    %c0_10 = arith.constant 0 : index
    %c0_11 = arith.constant 0 : index
    %c0_12 = arith.constant 0 : index
    %12 = vector.load %arg5[%c0_10, %c0_11, %c0_12] : memref<1x1x128xf32, #tpu.memory_space<vmem>>, vector<1x1x128xf32>
    tpu.vector_store %arg5[%c0_10, %c0_11, %c0_12], %11 {strides = array<i32>} : memref<1x1x128xf32, #tpu.memory_space<vmem>>, vector<1x1x128xf32>,
    return
  }
  func.func @transform_0(%arg0: i32) -> (i32, i32) {
    %c0_i32 = arith.constant 0 : i32
    %c0_i32_0 = arith.constant 0 : i32
    return %arg0, %c0_i32 : i32, i32
  }
  func.func @transform_1(%arg0: i32) -> (i32, i32) {
    %c0_i32 = arith.constant 0 : i32
    %c0_i32_0 = arith.constant 0 : i32
    %c0_i32_1 = arith.constant 0 : i32
    return %c0_i32, %c0_i32_0 : i32, i32
  }
  func.func @transform_2(%arg0: i32) -> (i32, i32) {
    %c0_i32 = arith.constant 0 : i32
    %c0_i32_0 = arith.constant 0 : i32
    return %arg0, %c0_i32 : i32, i32
  }
  func.func @transform_3(%arg0: i32) -> (i32, i32, i32) {
    %c0_i32 = arith.constant 0 : i32
    %c0_i32_0 = arith.constant 0 : i32
    %c0_i32_1 = arith.constant 0 : i32
    return %arg0, %c0_i32, %c0_i32_0 : i32, i32, i32
  }
  func.func @transform_4(%arg0: i32) -> (i32, i32, i32) {
    %c0_i32 = arith.constant 0 : i32
    %c0_i32_0 = arith.constant 0 : i32
    %c0_i32_1 = arith.constant 0 : i32
    return %arg0, %c0_i32, %c0_i32_0 : i32, i32, i32
  }
}

module attributes {stable_mosaic.version = 11 : i64} {
  func.func @bn_prelu_kernel(%arg0: i32, %arg1: memref<1xf32, #tpu.memory_space<smem>>, %arg2: memref<512x128xf32, #tpu.memory_space<vmem>>, %arg3: memref<1x128xf32, #tpu.memory_space<vmem>>, %arg4: memref<1x128xf32, #tpu.memory_space<vmem>>, %arg5: memref<512x128xf32, #tpu.memory_space<vmem>>) attributes {dimension_semantics = [#tpu.dimension_semantics<parallel>], iteration_bounds = array<i64: 1>, scalar_prefetch = 0 : i64, scratch_operands = 0 : i64, tpu.core_type = #tpu.core_type<tc>, window_params = [{transform_indices = @transform_0, window_bounds = array<i64: 1>}, {transform_indices = @transform_1, window_bounds = array<i64: 512, 128>}, {pipeline_mode = #tpu.pipeline_mode<synchronous>, transform_indices = @transform_2, window_bounds = array<i64: 1, 128>}, {pipeline_mode = #tpu.pipeline_mode<synchronous>, transform_indices = @transform_3, window_bounds = array<i64: 1, 128>}, {transform_indices = @transform_4, window_bounds = array<i64: 512, 128>}]} {
    %c0 = arith.constant 0 : index
    %c0_0 = arith.constant 0 : index
    %0 = vector.load %arg2[%c0, %c0_0] : memref<512x128xf32, #tpu.memory_space<vmem>>, vector<512x128xf32>
    %c0_1 = arith.constant 0 : index
    %c0_2 = arith.constant 0 : index
    %1 = vector.load %arg3[%c0_1, %c0_2] : memref<1x128xf32, #tpu.memory_space<vmem>>, vector<1x128xf32>
    %2 = vector.broadcast %1 : vector<1x128xf32> to vector<512x128xf32>
    %3 = arith.mulf %0, %2 : vector<512x128xf32>
    %c0_3 = arith.constant 0 : index
    %c0_4 = arith.constant 0 : index
    %4 = vector.load %arg4[%c0_3, %c0_4] : memref<1x128xf32, #tpu.memory_space<vmem>>, vector<1x128xf32>
    %5 = vector.broadcast %4 : vector<1x128xf32> to vector<512x128xf32>
    %6 = arith.addf %3, %5 : vector<512x128xf32>
    %c0_5 = arith.constant 0 : index
    %7 = memref.load %arg1[%c0_5] : memref<1xf32, #tpu.memory_space<smem>>
    %cst = arith.constant 0.000000e+00 : f32
    %8 = vector.broadcast %cst : f32 to vector<512x128xf32>
    %9 = arith.cmpf oge, %6, %8 : vector<512x128xf32>
    %10 = vector.broadcast %7 : f32 to vector<512x128xf32>
    %11 = arith.mulf %10, %6 : vector<512x128xf32>
    %12 = arith.select %9, %6, %11 : vector<512x128xi1>, vector<512x128xf32>
    %c0_6 = arith.constant 0 : index
    %c0_7 = arith.constant 0 : index
    %13 = vector.load %arg5[%c0_6, %c0_7] : memref<512x128xf32, #tpu.memory_space<vmem>>, vector<512x128xf32>
    tpu.vector_store %arg5[%c0_6, %c0_7], %12 {strides = array<i32>} : memref<512x128xf32, #tpu.memory_space<vmem>>, vector<512x128xf32>,
    return
  }
  func.func @transform_0(%arg0: i32) -> i32 {
    %c0_i32 = arith.constant 0 : i32
    %c0_i32_0 = arith.constant 0 : i32
    return %c0_i32 : i32
  }
  func.func @transform_1(%arg0: i32) -> (i32, i32) {
    %c0_i32 = arith.constant 0 : i32
    %c0_i32_0 = arith.constant 0 : i32
    return %arg0, %c0_i32 : i32, i32
  }
  func.func @transform_2(%arg0: i32) -> (i32, i32) {
    %c0_i32 = arith.constant 0 : i32
    %c0_i32_0 = arith.constant 0 : i32
    %c0_i32_1 = arith.constant 0 : i32
    return %c0_i32, %c0_i32_0 : i32, i32
  }
  func.func @transform_3(%arg0: i32) -> (i32, i32) {
    %c0_i32 = arith.constant 0 : i32
    %c0_i32_0 = arith.constant 0 : i32
    %c0_i32_1 = arith.constant 0 : i32
    return %c0_i32, %c0_i32_0 : i32, i32
  }
  func.func @transform_4(%arg0: i32) -> (i32, i32) {
    %c0_i32 = arith.constant 0 : i32
    %c0_i32_0 = arith.constant 0 : i32
    return %arg0, %c0_i32 : i32, i32
  }
}

</mosaic_0001>

<bundles_post_ra>
// kernel: binary_conv2d.3
= control target key start
LH: loop header
LB: loop body
LE: loop exit
PB: predicated region body
PF: predicated region fallthrough
CT: control target
= control target key end

     0   :  { %s1098_s1 = inlined_call_operand.vmem [shape: f32[512,128], index: 1, kind: input, shape index: {}]   ;;  %s1099_s2 = inlined_call_operand.vmem [shape: f32[1,128], index: 2, kind: input, shape index: {}]   ;;  %s1100_s3 = inlined_call_operand.vmem [shape: f32[1,128], index: 3, kind: input, shape index: {}]   ;;  %s1101_s0 = inlined_call_operand.<no memory space> [shape: f32[1], index: 0, kind: input, shape index: {}]   ;;  %s1102_s4 = inlined_call_operand.vmem [shape: f32[512,128], index: 4, kind: output, shape index: {}]  }
   0x1   :  { %v18_v0 = vld [vmem:[%s1098_s1] sm:$0xff]  ;;  %v19_v3 = vld [vmem:[%s1098_s1 + $0x8] sm:$0xff]  ;;  %v20_v6 = vld [vmem:[%s1098_s1 + $0x10] sm:$0xff]  ;;  %v537_v9 = vstv %s1101_s0 }
   0x2   :  { %v513_v1 = vld [vmem:[%s1099_s2] ss:$0 sm:$0xff]  ;;  %v21_v7 = vld [vmem:[%s1098_s1 + $0x18] sm:$0xff]  ;;  %v23_v13 = vld [vmem:[%s1098_s1 + $0x28] sm:$0xff] }
   0x3   :  { %v518_v2 = vld [vmem:[%s1100_s3] ss:$0 sm:$0xff]  ;;  %v86_v4 = vmul.f32 %v513_v1, %v18_v0  ;;  %v87_v5 = vmul.f32 %v513_v1, %v19_v3  ;;  %v88_v10 = vmul.f32 %v513_v1, %v20_v6  ;;  %v89_v11 = vmul.f32 %v513_v1, %v21_v7  ;;  %v24_v14 = vld [vmem:[%s1098_s1 + $0x30] sm:$0xff]  ;;  %v25_v15 = vld [vmem:[%s1098_s1 + $0x38] sm:$0xff] }
   0x4   :  { %v22_v8 = vld [vmem:[%s1098_s1 + $0x20] sm:$0xff]  ;;  %v91_v18 = vmul.f32 %v513_v1, %v23_v13  ;;  %v92_v19 = vmul.f32 %v513_v1, %v24_v14  ;;  %v93_v23 = vmul.f32 %v513_v1, %v25_v15  ;;  %v27_v29 = vld [vmem:[%s1098_s1 + $0x48] sm:$0xff]  ;;  %v28_v41 = vld [vmem:[%s1098_s1 + $0x50] sm:$0xff] }
   0x5   :  { %v90_v12 = vmul.f32 %v513_v1, %v22_v8  ;;  %v154_v16 = vadd.f32 %v518_v2, %v86_v4  ;;  %v155_v17 = vadd.f32 %v518_v2, %v87_v5  ;;  %v156_v20 = vadd.f32 %v518_v2, %v88_v10  ;;  %v26_v28 = vld [vmem:[%s1098_s1 + $0x40] sm:$0xff]  ;;  %v29_v42 = vld [vmem:[%s1098_s1 + $0x58] sm:$0xff]  ;;  %v31_v53 = vld [vmem:[%s1098_s1 + $0x68] sm:$0xff] }
   0x6   :  { %v157_v21 = vadd.f32 %v518_v2, %v89_v11  ;;  %v159_v35 = vadd.f32 %v518_v2, %v91_v18  ;;  %v160_v36 = vadd.f32 %v518_v2, %v92_v19  ;;  %v161_v38 = vadd.f32 %v518_v2, %v93_v23  ;;  %v30_v48 = vld [vmem:[%s1098_s1 + $0x60] sm:$0xff]  ;;  %v32_v54 = vld [vmem:[%s1098_s1 + $0x70] sm:$0xff]  ;;  %v33_v55 = vld [vmem:[%s1098_s1 + $0x78] sm:$0xff] }
   0x7   :  { %v158_v22 = vadd.f32 %v518_v2, %v90_v12  ;;  %vm219_vm0 = vcmp.ge.f32.partialorder %v154_v16, 0.0  ;;  %v284_v24 = vmul.f32 %v537_v9, %v154_v16  ;;  %vm220_vm1 = vcmp.ge.f32.partialorder %v155_v17, 0.0  ;;  %v34_v4 = vld [vmem:[%s1098_s1 + $0x80] sm:$0xff]  ;;  %v35_v5 = vld [vmem:[%s1098_s1 + $0x88] sm:$0xff]  ;;  %v36_v19 = vld [vmem:[%s1098_s1 + $0x90] sm:$0xff] }
   0x8   :  { %v285_v25 = vmul.f32 %v537_v9, %v155_v17  ;;  %vm221_vm2 = vcmp.ge.f32.partialorder %v156_v20, 0.0  ;;  %v286_v26 = vmul.f32 %v537_v9, %v156_v20  ;;  %vm222_vm3 = vcmp.ge.f32.partialorder %v157_v21, 0.0 }
   0x9   :  { %v287_v27 = vmul.f32 %v537_v9, %v157_v21  ;;  %v348_v30 = vsel %vm219_vm0, %v154_v16, %v284_v24  ;;  %vm223_vm4 = vcmp.ge.f32.partialorder %v158_v22, 0.0  ;;  %v288_v32 = vmul.f32 %v537_v9, %v158_v22 }
   0xa   :  { %v349_v31 = vsel %vm220_vm1, %v155_v17, %v285_v25  ;;  %412 = vst [vmem:[%s1102_s4] sm:$0xff] %v348_v30  ;;  %v350_v33 = vsel %vm221_vm2, %v156_v20, %v286_v26  ;;  %v94_v39 = vmul.f32 %v513_v1, %v26_v28  ;;  %v95_v40 = vmul.f32 %v513_v1, %v27_v29  ;;  %v37_v20 = vld [vmem:[%s1098_s1 + $0x98] sm:$0xff] }
   0xb   :  { %v351_v34 = vsel %vm222_vm3, %v157_v21, %v287_v27  ;;  %413 = vst [vmem:[%s1102_s4 + $0x8] sm:$0xff] %v349_v31  ;;  %v352_v37 = vsel %vm223_vm4, %v158_v22, %v288_v32  ;;  %vm224_vm5 = vcmp.ge.f32.partialorder %v159_v35, 0.0  ;;  %v289_v43 = vmul.f32 %v537_v9, %v159_v35  ;;  %v38_v27 = vld [vmem:[%s1098_s1 + $0xa0] sm:$0xff]  ;;  %v39_v32 = vld [vmem:[%s1098_s1 + $0xa8] sm:$0xff] }
   0xc   :  { %414 = vst [vmem:[%s1102_s4 + $0x10] sm:$0xff] %v350_v33  ;;  %vm225_vm6 = vcmp.ge.f32.partialorder %v160_v36, 0.0  ;;  %v290_v44 = vmul.f32 %v537_v9, %v160_v36  ;;  %vm226_vm7 = vcmp.ge.f32.partialorder %v161_v38, 0.0  ;;  %v291_v45 = vmul.f32 %v537_v9, %v161_v38  ;;  %v40_v33 = vld [vmem:[%s1098_s1 + $0xb0] sm:$0xff] }
   0xd   :  { %415 = vst [vmem:[%s1102_s4 + $0x18] sm:$0xff] %v351_v34  ;;  %v162_v46 = vadd.f32 %v518_v2, %v94_v39  ;;  %v163_v47 = vadd.f32 %v518_v2, %v95_v40  ;;  %v353_v49 = vsel %vm224_vm5, %v159_v35, %v289_v43  ;;  %v96_v51 = vmul.f32 %v513_v1, %v28_v41  ;;  %v41_v34 = vld [vmem:[%s1098_s1 + $0xb8] sm:$0xff] }
   0xe   :  { %416 = vst [vmem:[%s1102_s4 + $0x20] sm:$0xff] %v352_v37  ;;  %v354_v50 = vsel %vm225_vm6, %v160_v36, %v290_v44  ;;  %v97_v52 = vmul.f32 %v513_v1, %v29_v42  ;;  %v355_v56 = vsel %vm226_vm7, %v161_v38, %v291_v45  ;;  %v98_v61 = vmul.f32 %v513_v1, %v30_v48  ;;  %v42_v45 = vld [vmem:[%s1098_s1 + $0xc0] sm:$0xff] }
   0xf   :  { %417 = vst [vmem:[%s1102_s4 + $0x28] sm:$0xff] %v353_v49  ;;  %vm227_vm8 = vcmp.ge.f32.partialorder %v162_v46, 0.0  ;;  %v292_v57 = vmul.f32 %v537_v9, %v162_v46  ;;  %vm228_vm9 = vcmp.ge.f32.partialorder %v163_v47, 0.0  ;;  %v293_v58 = vmul.f32 %v537_v9, %v163_v47 }
  0x10   :  { %418 = vst [vmem:[%s1102_s4 + $0x30] sm:$0xff] %v354_v50  ;;  %v164_v59 = vadd.f32 %v518_v2, %v96_v51  ;;  %v165_v60 = vadd.f32 %v518_v2, %v97_v52  ;;  %v99_v63 = vmul.f32 %v513_v1, %v31_v53  ;;  %v100_v0 = vmul.f32 %v513_v1, %v32_v54 }
  0x11   :  { %419 = vst [vmem:[%s1102_s4 + $0x38] sm:$0xff] %v355_v56  ;;  %v356_v62 = vsel %vm227_vm8, %v162_v46, %v292_v57  ;;  %v101_v3 = vmul.f32 %v513_v1, %v33_v55  ;;  %v357_v6 = vsel %vm228_vm9, %v163_v47, %v293_v58  ;;  %v166_v10 = vadd.f32 %v518_v2, %v98_v61  ;;  %v43_v46 = vld [vmem:[%s1098_s1 + $0xc8] sm:$0xff] }
  0x12   :  { %420 = vst [vmem:[%s1102_s4 + $0x40] sm:$0xff] %v356_v62  ;;  %vm229_vm10 = vcmp.ge.f32.partialorder %v164_v59, 0.0  ;;  %v294_v7 = vmul.f32 %v537_v9, %v164_v59  ;;  %vm230_vm11 = vcmp.ge.f32.partialorder %v165_v60, 0.0  ;;  %v295_v8 = vmul.f32 %v537_v9, %v165_v60 }
  0x13   :  { %421 = vst [vmem:[%s1102_s4 + $0x48] sm:$0xff] %v357_v6  ;;  %v167_v11 = vadd.f32 %v518_v2, %v99_v63  ;;  %v168_v12 = vadd.f32 %v518_v2, %v100_v0  ;;  %v169_v14 = vadd.f32 %v518_v2, %v101_v3  ;;  %v102_v15 = vmul.f32 %v513_v1, %v34_v4 }
  0x14   :  { %v358_v13 = vsel %vm229_vm10, %v164_v59, %v294_v7  ;;  %v103_v16 = vmul.f32 %v513_v1, %v35_v5  ;;  %v359_v17 = vsel %vm230_vm11, %v165_v60, %v295_v8  ;;  %vm231_vm12 = vcmp.ge.f32.partialorder %v166_v10, 0.0  ;;  %v44_v59 = vld [vmem:[%s1098_s1 + $0xd0] sm:$0xff]  ;;  %v45_v60 = vld [vmem:[%s1098_s1 + $0xd8] sm:$0xff]  ;;  %v46_v5 = vld [vmem:[%s1098_s1 + $0xe0] sm:$0xff] }
  0x15   :  { %422 = vst [vmem:[%s1102_s4 + $0x50] sm:$0xff] %v358_v13  ;;  %v296_v18 = vmul.f32 %v537_v9, %v166_v10  ;;  %vm232_vm13 = vcmp.ge.f32.partialorder %v167_v11, 0.0  ;;  %v297_v21 = vmul.f32 %v537_v9, %v167_v11  ;;  %vm233_vm14 = vcmp.ge.f32.partialorder %v168_v12, 0.0  ;;  %v49_v13 = vld [vmem:[%s1098_s1 + $0xf8] sm:$0xff] }
  0x16   :  { %423 = vst [vmem:[%s1102_s4 + $0x58] sm:$0xff] %v359_v17  ;;  %v298_v22 = vmul.f32 %v537_v9, %v168_v12  ;;  %vm234_vm15 = vcmp.ge.f32.partialorder %v169_v14, 0.0  ;;  %v299_v24 = vmul.f32 %v537_v9, %v169_v14  ;;  %v170_v25 = vadd.f32 %v518_v2, %v102_v15 }
  0x17   :  { %v360_v23 = vsel %vm231_vm12, %v166_v10, %v296_v18  ;;  %v171_v26 = vadd.f32 %v518_v2, %v103_v16  ;;  %v361_v28 = vsel %vm232_vm13, %v167_v11, %v297_v21  ;;  %v104_v30 = vmul.f32 %v513_v1, %v36_v19  ;;  %v47_v11 = vld [vmem:[%s1098_s1 + $0xe8] sm:$0xff] }
  0x18   :  { %424 = vst [vmem:[%s1102_s4 + $0x60] sm:$0xff] %v360_v23  ;;  %v362_v29 = vsel %vm233_vm14, %v168_v12, %v298_v22  ;;  %v105_v31 = vmul.f32 %v513_v1, %v37_v20  ;;  %v363_v35 = vsel %vm234_vm15, %v169_v14, %v299_v24  ;;  %vm235_vm0 = vcmp.ge.f32.partialorder %v170_v25, 0.0  ;;  %v48_v12 = vld [vmem:[%s1098_s1 + $0xf0] sm:$0xff]  ;;  %v50_v24 = vld [vmem:[%s1098_s1 + $0x100] sm:$0xff] }
  0x19   :  { %425 = vst [vmem:[%s1102_s4 + $0x68] sm:$0xff] %v361_v28  ;;  %v300_v36 = vmul.f32 %v537_v9, %v170_v25  ;;  %vm236_vm1 = vcmp.ge.f32.partialorder %v171_v26, 0.0  ;;  %v301_v37 = vmul.f32 %v537_v9, %v171_v26  ;;  %v172_v38 = vadd.f32 %v518_v2, %v104_v30 }
  0x1a   :  { %426 = vst [vmem:[%s1102_s4 + $0x70] sm:$0xff] %v362_v29  ;;  %v173_v39 = vadd.f32 %v518_v2, %v105_v31  ;;  %v106_v40 = vmul.f32 %v513_v1, %v38_v27  ;;  %v107_v42 = vmul.f32 %v513_v1, %v39_v32  ;;  %v108_v43 = vmul.f32 %v513_v1, %v40_v33 }
  0x1b   :  { %427 = vst [vmem:[%s1102_s4 + $0x78] sm:$0xff] %v363_v35  ;;  %v364_v41 = vsel %vm235_vm0, %v170_v25, %v300_v36  ;;  %v109_v44 = vmul.f32 %v513_v1, %v41_v34  ;;  %v365_v47 = vsel %vm236_vm1, %v171_v26, %v301_v37  ;;  %vm237_vm2 = vcmp.ge.f32.partialorder %v172_v38, 0.0  ;;  %v51_v25 = vld [vmem:[%s1098_s1 + $0x108] sm:$0xff] }
  0x1c   :  { %428 = vst [vmem:[%s1102_s4 + $0x80] sm:$0xff] %v364_v41  ;;  %v302_v48 = vmul.f32 %v537_v9, %v172_v38  ;;  %vm238_vm3 = vcmp.ge.f32.partialorder %v173_v39, 0.0  ;;  %v303_v49 = vmul.f32 %v537_v9, %v173_v39  ;;  %v174_v50 = vadd.f32 %v518_v2, %v106_v40 }
  0x1d   :  { %429 = vst [vmem:[%s1102_s4 + $0x88] sm:$0xff] %v365_v47  ;;  %v175_v51 = vadd.f32 %v518_v2, %v107_v42  ;;  %v176_v52 = vadd.f32 %v518_v2, %v108_v43  ;;  %v177_v54 = vadd.f32 %v518_v2, %v109_v44  ;;  %v110_v55 = vmul.f32 %v513_v1, %v42_v45 }
  0x1e   :  { %v366_v53 = vsel %vm237_vm2, %v172_v38, %v302_v48  ;;  %v111_v56 = vmul.f32 %v513_v1, %v43_v46  ;;  %v367_v57 = vsel %vm238_vm3, %v173_v39, %v303_v49  ;;  %vm239_vm4 = vcmp.ge.f32.partialorder %v174_v50, 0.0  ;;  %v52_v38 = vld [vmem:[%s1098_s1 + $0x110] sm:$0xff]  ;;  %v53_v39 = vld [vmem:[%s1098_s1 + $0x118] sm:$0xff]  ;;  %v54_v46 = vld [vmem:[%s1098_s1 + $0x120] sm:$0xff] }
  0x1f   :  { %430 = vst [vmem:[%s1102_s4 + $0x90] sm:$0xff] %v366_v53  ;;  %v304_v58 = vmul.f32 %v537_v9, %v174_v50  ;;  %vm240_vm5 = vcmp.ge.f32.partialorder %v175_v51, 0.0  ;;  %v305_v61 = vmul.f32 %v537_v9, %v175_v51  ;;  %vm241_vm6 = vcmp.ge.f32.partialorder %v176_v52, 0.0  ;;  %v57_v53 = vld [vmem:[%s1098_s1 + $0x138] sm:$0xff] }
  0x20   :  { %431 = vst [vmem:[%s1102_s4 + $0x98] sm:$0xff] %v367_v57  ;;  %v306_v62 = vmul.f32 %v537_v9, %v176_v52  ;;  %vm242_vm7 = vcmp.ge.f32.partialorder %v177_v54, 0.0  ;;  %v307_v0 = vmul.f32 %v537_v9, %v177_v54  ;;  %v178_v3 = vadd.f32 %v518_v2, %v110_v55 }
  0x21   :  { %v368_v63 = vsel %vm239_vm4, %v174_v50, %v304_v58  ;;  %v179_v4 = vadd.f32 %v518_v2, %v111_v56  ;;  %v369_v6 = vsel %vm240_vm5, %v175_v51, %v305_v61  ;;  %v112_v8 = vmul.f32 %v513_v1, %v44_v59  ;;  %v55_v51 = vld [vmem:[%s1098_s1 + $0x128] sm:$0xff] }
  0x22   :  { %432 = vst [vmem:[%s1102_s4 + $0xa0] sm:$0xff] %v368_v63  ;;  %v370_v7 = vsel %vm241_vm6, %v176_v52, %v306_v62  ;;  %v113_v10 = vmul.f32 %v513_v1, %v45_v60  ;;  %v371_v14 = vsel %vm242_vm7, %v177_v54, %v307_v0  ;;  %vm243_vm8 = vcmp.ge.f32.partialorder %v178_v3, 0.0  ;;  %v56_v52 = vld [vmem:[%s1098_s1 + $0x130] sm:$0xff]  ;;  %v58_v0 = vld [vmem:[%s1098_s1 + $0x140] sm:$0xff] }
  0x23   :  { %433 = vst [vmem:[%s1102_s4 + $0xa8] sm:$0xff] %v369_v6  ;;  %v308_v15 = vmul.f32 %v537_v9, %v178_v3  ;;  %vm244_vm9 = vcmp.ge.f32.partialorder %v179_v4, 0.0  ;;  %v309_v16 = vmul.f32 %v537_v9, %v179_v4  ;;  %v180_v17 = vadd.f32 %v518_v2, %v112_v8 }
  0x24   :  { %434 = vst [vmem:[%s1102_s4 + $0xb0] sm:$0xff] %v370_v7  ;;  %v181_v18 = vadd.f32 %v518_v2, %v113_v10  ;;  %v114_v19 = vmul.f32 %v513_v1, %v46_v5  ;;  %v115_v21 = vmul.f32 %v513_v1, %v47_v11  ;;  %v116_v22 = vmul.f32 %v513_v1, %v48_v12 }
  0x25   :  { %435 = vst [vmem:[%s1102_s4 + $0xb8] sm:$0xff] %v371_v14  ;;  %v372_v20 = vsel %vm243_vm8, %v178_v3, %v308_v15  ;;  %v117_v23 = vmul.f32 %v513_v1, %v49_v13  ;;  %v373_v26 = vsel %vm244_vm9, %v179_v4, %v309_v16  ;;  %vm245_vm10 = vcmp.ge.f32.partialorder %v180_v17, 0.0  ;;  %v59_v3 = vld [vmem:[%s1098_s1 + $0x148] sm:$0xff] }
  0x26   :  { %436 = vst [vmem:[%s1102_s4 + $0xc0] sm:$0xff] %v372_v20  ;;  %v310_v27 = vmul.f32 %v537_v9, %v180_v17  ;;  %vm246_vm11 = vcmp.ge.f32.partialorder %v181_v18, 0.0  ;;  %v311_v28 = vmul.f32 %v537_v9, %v181_v18  ;;  %v182_v29 = vadd.f32 %v518_v2, %v114_v19 }
  0x27   :  { %437 = vst [vmem:[%s1102_s4 + $0xc8] sm:$0xff] %v373_v26  ;;  %v183_v30 = vadd.f32 %v518_v2, %v115_v21  ;;  %v184_v31 = vadd.f32 %v518_v2, %v116_v22  ;;  %v185_v33 = vadd.f32 %v518_v2, %v117_v23  ;;  %v118_v34 = vmul.f32 %v513_v1, %v50_v24 }
  0x28   :  { %v374_v32 = vsel %vm245_vm10, %v180_v17, %v310_v27  ;;  %v119_v35 = vmul.f32 %v513_v1, %v51_v25  ;;  %v375_v36 = vsel %vm246_vm11, %v181_v18, %v311_v28  ;;  %vm247_vm12 = vcmp.ge.f32.partialorder %v182_v29, 0.0  ;;  %v60_v17 = vld [vmem:[%s1098_s1 + $0x150] sm:$0xff]  ;;  %v61_v18 = vld [vmem:[%s1098_s1 + $0x158] sm:$0xff]  ;;  %v62_v25 = vld [vmem:[%s1098_s1 + $0x160] sm:$0xff] }
  0x29   :  { %438 = vst [vmem:[%s1102_s4 + $0xd0] sm:$0xff] %v374_v32  ;;  %v312_v37 = vmul.f32 %v537_v9, %v182_v29  ;;  %vm248_vm13 = vcmp.ge.f32.partialorder %v183_v30, 0.0  ;;  %v313_v40 = vmul.f32 %v537_v9, %v183_v30  ;;  %vm249_vm14 = vcmp.ge.f32.partialorder %v184_v31, 0.0  ;;  %v65_v32 = vld [vmem:[%s1098_s1 + $0x178] sm:$0xff] }
  0x2a   :  { %439 = vst [vmem:[%s1102_s4 + $0xd8] sm:$0xff] %v375_v36  ;;  %v314_v41 = vmul.f32 %v537_v9, %v184_v31  ;;  %vm250_vm15 = vcmp.ge.f32.partialorder %v185_v33, 0.0  ;;  %v315_v43 = vmul.f32 %v537_v9, %v185_v33  ;;  %v186_v44 = vadd.f32 %v518_v2, %v118_v34 }
  0x2b   :  { %v376_v42 = vsel %vm247_vm12, %v182_v29, %v312_v37  ;;  %v187_v45 = vadd.f32 %v518_v2, %v119_v35  ;;  %v377_v47 = vsel %vm248_vm13, %v183_v30, %v313_v40  ;;  %v120_v49 = vmul.f32 %v513_v1, %v52_v38  ;;  %v63_v30 = vld [vmem:[%s1098_s1 + $0x168] sm:$0xff] }
  0x2c   :  { %440 = vst [vmem:[%s1102_s4 + $0xe0] sm:$0xff] %v376_v42  ;;  %v378_v48 = vsel %vm249_vm14, %v184_v31, %v314_v41  ;;  %v121_v50 = vmul.f32 %v513_v1, %v53_v39  ;;  %v379_v54 = vsel %vm250_vm15, %v185_v33, %v315_v43  ;;  %vm251_vm0 = vcmp.ge.f32.partialorder %v186_v44, 0.0  ;;  %v64_v31 = vld [vmem:[%s1098_s1 + $0x170] sm:$0xff]  ;;  %v66_v43 = vld [vmem:[%s1098_s1 + $0x180] sm:$0xff] }
  0x2d   :  { %441 = vst [vmem:[%s1102_s4 + $0xe8] sm:$0xff] %v377_v47  ;;  %v316_v55 = vmul.f32 %v537_v9, %v186_v44  ;;  %vm252_vm1 = vcmp.ge.f32.partialorder %v187_v45, 0.0  ;;  %v317_v56 = vmul.f32 %v537_v9, %v187_v45  ;;  %v188_v57 = vadd.f32 %v518_v2, %v120_v49 }
  0x2e   :  { %442 = vst [vmem:[%s1102_s4 + $0xf0] sm:$0xff] %v378_v48  ;;  %v189_v58 = vadd.f32 %v518_v2, %v121_v50  ;;  %v122_v59 = vmul.f32 %v513_v1, %v54_v46  ;;  %v123_v61 = vmul.f32 %v513_v1, %v55_v51  ;;  %v124_v62 = vmul.f32 %v513_v1, %v56_v52 }
  0x2f   :  { %443 = vst [vmem:[%s1102_s4 + $0xf8] sm:$0xff] %v379_v54  ;;  %v380_v60 = vsel %vm251_vm0, %v186_v44, %v316_v55  ;;  %v125_v63 = vmul.f32 %v513_v1, %v57_v53  ;;  %v381_v4 = vsel %vm252_vm1, %v187_v45, %v317_v56  ;;  %vm253_vm2 = vcmp.ge.f32.partialorder %v188_v57, 0.0  ;;  %v67_v44 = vld [vmem:[%s1098_s1 + $0x188] sm:$0xff] }
  0x30   :  { %444 = vst [vmem:[%s1102_s4 + $0x100] sm:$0xff] %v380_v60  ;;  %v318_v5 = vmul.f32 %v537_v9, %v188_v57  ;;  %vm254_vm3 = vcmp.ge.f32.partialorder %v189_v58, 0.0  ;;  %v319_v6 = vmul.f32 %v537_v9, %v189_v58  ;;  %v190_v7 = vadd.f32 %v518_v2, %v122_v59 }
  0x31   :  { %445 = vst [vmem:[%s1102_s4 + $0x108] sm:$0xff] %v381_v4  ;;  %v191_v8 = vadd.f32 %v518_v2, %v123_v61  ;;  %v192_v10 = vadd.f32 %v518_v2, %v124_v62  ;;  %v193_v12 = vadd.f32 %v518_v2, %v125_v63  ;;  %v126_v13 = vmul.f32 %v513_v1, %v58_v0 }
  0x32   :  { %v382_v11 = vsel %vm253_vm2, %v188_v57, %v318_v5  ;;  %v127_v14 = vmul.f32 %v513_v1, %v59_v3  ;;  %v383_v15 = vsel %vm254_vm3, %v189_v58, %v319_v6  ;;  %vm255_vm4 = vcmp.ge.f32.partialorder %v190_v7, 0.0  ;;  %v68_v57 = vld [vmem:[%s1098_s1 + $0x190] sm:$0xff]  ;;  %v69_v58 = vld [vmem:[%s1098_s1 + $0x198] sm:$0xff]  ;;  %v70_v3 = vld [vmem:[%s1098_s1 + $0x1a0] sm:$0xff] }
  0x33   :  { %446 = vst [vmem:[%s1102_s4 + $0x110] sm:$0xff] %v382_v11  ;;  %v320_v16 = vmul.f32 %v537_v9, %v190_v7  ;;  %vm256_vm5 = vcmp.ge.f32.partialorder %v191_v8, 0.0  ;;  %v321_v19 = vmul.f32 %v537_v9, %v191_v8  ;;  %vm257_vm6 = vcmp.ge.f32.partialorder %v192_v10, 0.0  ;;  %v73_v11 = vld [vmem:[%s1098_s1 + $0x1b8] sm:$0xff] }
  0x34   :  { %447 = vst [vmem:[%s1102_s4 + $0x118] sm:$0xff] %v383_v15  ;;  %v322_v20 = vmul.f32 %v537_v9, %v192_v10  ;;  %vm258_vm7 = vcmp.ge.f32.partialorder %v193_v12, 0.0  ;;  %v323_v22 = vmul.f32 %v537_v9, %v193_v12  ;;  %v194_v23 = vadd.f32 %v518_v2, %v126_v13 }
  0x35   :  { %v384_v21 = vsel %vm255_vm4, %v190_v7, %v320_v16  ;;  %v195_v24 = vadd.f32 %v518_v2, %v127_v14  ;;  %v385_v26 = vsel %vm256_vm5, %v191_v8, %v321_v19  ;;  %v128_v28 = vmul.f32 %v513_v1, %v60_v17  ;;  %v71_v8 = vld [vmem:[%s1098_s1 + $0x1a8] sm:$0xff] }
  0x36   :  { %448 = vst [vmem:[%s1102_s4 + $0x120] sm:$0xff] %v384_v21  ;;  %v386_v27 = vsel %vm257_vm6, %v192_v10, %v322_v20  ;;  %v129_v29 = vmul.f32 %v513_v1, %v61_v18  ;;  %v387_v33 = vsel %vm258_vm7, %v193_v12, %v323_v22  ;;  %vm259_vm8 = vcmp.ge.f32.partialorder %v194_v23, 0.0  ;;  %v72_v10 = vld [vmem:[%s1098_s1 + $0x1b0] sm:$0xff]  ;;  %v74_v22 = vld [vmem:[%s1098_s1 + $0x1c0] sm:$0xff] }
  0x37   :  { %449 = vst [vmem:[%s1102_s4 + $0x128] sm:$0xff] %v385_v26  ;;  %v324_v34 = vmul.f32 %v537_v9, %v194_v23  ;;  %vm260_vm9 = vcmp.ge.f32.partialorder %v195_v24, 0.0  ;;  %v325_v35 = vmul.f32 %v537_v9, %v195_v24  ;;  %v196_v36 = vadd.f32 %v518_v2, %v128_v28 }
  0x38   :  { %450 = vst [vmem:[%s1102_s4 + $0x130] sm:$0xff] %v386_v27  ;;  %v197_v37 = vadd.f32 %v518_v2, %v129_v29  ;;  %v130_v38 = vmul.f32 %v513_v1, %v62_v25  ;;  %v131_v40 = vmul.f32 %v513_v1, %v63_v30  ;;  %v132_v41 = vmul.f32 %v513_v1, %v64_v31 }
  0x39   :  { %451 = vst [vmem:[%s1102_s4 + $0x138] sm:$0xff] %v387_v33  ;;  %v388_v39 = vsel %vm259_vm8, %v194_v23, %v324_v34  ;;  %v133_v42 = vmul.f32 %v513_v1, %v65_v32  ;;  %v389_v45 = vsel %vm260_vm9, %v195_v24, %v325_v35  ;;  %vm261_vm10 = vcmp.ge.f32.partialorder %v196_v36, 0.0  ;;  %v75_v23 = vld [vmem:[%s1098_s1 + $0x1c8] sm:$0xff] }
  0x3a   :  { %452 = vst [vmem:[%s1102_s4 + $0x140] sm:$0xff] %v388_v39  ;;  %v326_v46 = vmul.f32 %v537_v9, %v196_v36  ;;  %vm262_vm11 = vcmp.ge.f32.partialorder %v197_v37, 0.0  ;;  %v327_v47 = vmul.f32 %v537_v9, %v197_v37  ;;  %v198_v48 = vadd.f32 %v518_v2, %v130_v38 }
  0x3b   :  { %453 = vst [vmem:[%s1102_s4 + $0x148] sm:$0xff] %v389_v45  ;;  %v199_v49 = vadd.f32 %v518_v2, %v131_v40  ;;  %v200_v50 = vadd.f32 %v518_v2, %v132_v41  ;;  %v201_v52 = vadd.f32 %v518_v2, %v133_v42  ;;  %v134_v53 = vmul.f32 %v513_v1, %v66_v43 }
  0x3c   :  { %v390_v51 = vsel %vm261_vm10, %v196_v36, %v326_v46  ;;  %v135_v54 = vmul.f32 %v513_v1, %v67_v44  ;;  %v391_v55 = vsel %vm262_vm11, %v197_v37, %v327_v47  ;;  %vm263_vm12 = vcmp.ge.f32.partialorder %v198_v48, 0.0  ;;  %v76_v36 = vld [vmem:[%s1098_s1 + $0x1d0] sm:$0xff]  ;;  %v77_v37 = vld [vmem:[%s1098_s1 + $0x1d8] sm:$0xff]  ;;  %v78_v44 = vld [vmem:[%s1098_s1 + $0x1e0] sm:$0xff] }
  0x3d   :  { %454 = vst [vmem:[%s1102_s4 + $0x150] sm:$0xff] %v390_v51  ;;  %v328_v56 = vmul.f32 %v537_v9, %v198_v48  ;;  %vm264_vm13 = vcmp.ge.f32.partialorder %v199_v49, 0.0  ;;  %v329_v59 = vmul.f32 %v537_v9, %v199_v49  ;;  %vm265_vm14 = vcmp.ge.f32.partialorder %v200_v50, 0.0  ;;  %v81_v51 = vld [vmem:[%s1098_s1 + $0x1f8] sm:$0xff] }
  0x3e   :  { %455 = vst [vmem:[%s1102_s4 + $0x158] sm:$0xff] %v391_v55  ;;  %v330_v60 = vmul.f32 %v537_v9, %v200_v50  ;;  %vm266_vm15 = vcmp.ge.f32.partialorder %v201_v52, 0.0  ;;  %v331_v62 = vmul.f32 %v537_v9, %v201_v52  ;;  %v202_v63 = vadd.f32 %v518_v2, %v134_v53 }
  0x3f   :  { %v392_v61 = vsel %vm263_vm12, %v198_v48, %v328_v56  ;;  %v203_v0 = vadd.f32 %v518_v2, %v135_v54  ;;  %v393_v4 = vsel %vm264_vm13, %v199_v49, %v329_v59  ;;  %v136_v6 = vmul.f32 %v513_v1, %v68_v57  ;;  %v79_v49 = vld [vmem:[%s1098_s1 + $0x1e8] sm:$0xff] }
  0x40   :  { %456 = vst [vmem:[%s1102_s4 + $0x160] sm:$0xff] %v392_v61  ;;  %v394_v5 = vsel %vm265_vm14, %v200_v50, %v330_v60  ;;  %v137_v7 = vmul.f32 %v513_v1, %v69_v58  ;;  %v395_v12 = vsel %vm266_vm15, %v201_v52, %v331_v62  ;;  %vm267_vm0 = vcmp.ge.f32.partialorder %v202_v63, 0.0  ;;  %v80_v50 = vld [vmem:[%s1098_s1 + $0x1f0] sm:$0xff] }
  0x41   :  { %457 = vst [vmem:[%s1102_s4 + $0x168] sm:$0xff] %v393_v4  ;;  %v332_v13 = vmul.f32 %v537_v9, %v202_v63  ;;  %vm268_vm1 = vcmp.ge.f32.partialorder %v203_v0, 0.0  ;;  %v333_v14 = vmul.f32 %v537_v9, %v203_v0  ;;  %v204_v15 = vadd.f32 %v518_v2, %v136_v6 }
  0x42   :  { %458 = vst [vmem:[%s1102_s4 + $0x170] sm:$0xff] %v394_v5  ;;  %v205_v16 = vadd.f32 %v518_v2, %v137_v7  ;;  %v138_v17 = vmul.f32 %v513_v1, %v70_v3  ;;  %v139_v19 = vmul.f32 %v513_v1, %v71_v8  ;;  %v140_v20 = vmul.f32 %v513_v1, %v72_v10 }
  0x43   :  { %459 = vst [vmem:[%s1102_s4 + $0x178] sm:$0xff] %v395_v12  ;;  %v396_v18 = vsel %vm267_vm0, %v202_v63, %v332_v13  ;;  %v141_v21 = vmul.f32 %v513_v1, %v73_v11  ;;  %v397_v24 = vsel %vm268_vm1, %v203_v0, %v333_v14  ;;  %vm269_vm2 = vcmp.ge.f32.partialorder %v204_v15, 0.0 }
  0x44   :  { %460 = vst [vmem:[%s1102_s4 + $0x180] sm:$0xff] %v396_v18  ;;  %v334_v25 = vmul.f32 %v537_v9, %v204_v15  ;;  %vm270_vm3 = vcmp.ge.f32.partialorder %v205_v16, 0.0  ;;  %v335_v26 = vmul.f32 %v537_v9, %v205_v16  ;;  %v206_v27 = vadd.f32 %v518_v2, %v138_v17 }
  0x45   :  { %461 = vst [vmem:[%s1102_s4 + $0x188] sm:$0xff] %v397_v24  ;;  %v207_v28 = vadd.f32 %v518_v2, %v139_v19  ;;  %v208_v29 = vadd.f32 %v518_v2, %v140_v20  ;;  %v209_v31 = vadd.f32 %v518_v2, %v141_v21  ;;  %v142_v32 = vmul.f32 %v513_v1, %v74_v22 }
  0x46   :  { %v398_v30 = vsel %vm269_vm2, %v204_v15, %v334_v25  ;;  %v143_v33 = vmul.f32 %v513_v1, %v75_v23  ;;  %v399_v34 = vsel %vm270_vm3, %v205_v16, %v335_v26  ;;  %vm271_vm4 = vcmp.ge.f32.partialorder %v206_v27, 0.0 }
  0x47   :  { %462 = vst [vmem:[%s1102_s4 + $0x190] sm:$0xff] %v398_v30  ;;  %v336_v35 = vmul.f32 %v537_v9, %v206_v27  ;;  %vm272_vm5 = vcmp.ge.f32.partialorder %v207_v28, 0.0  ;;  %v337_v38 = vmul.f32 %v537_v9, %v207_v28  ;;  %vm273_vm6 = vcmp.ge.f32.partialorder %v208_v29, 0.0 }
  0x48   :  { %463 = vst [vmem:[%s1102_s4 + $0x198] sm:$0xff] %v399_v34  ;;  %v338_v39 = vmul.f32 %v537_v9, %v208_v29  ;;  %vm274_vm7 = vcmp.ge.f32.partialorder %v209_v31, 0.0  ;;  %v339_v41 = vmul.f32 %v537_v9, %v209_v31  ;;  %v210_v42 = vadd.f32 %v518_v2, %v142_v32 }
  0x49   :  { %v400_v40 = vsel %vm271_vm4, %v206_v27, %v336_v35  ;;  %v211_v43 = vadd.f32 %v518_v2, %v143_v33  ;;  %v401_v45 = vsel %vm272_vm5, %v207_v28, %v337_v38  ;;  %v144_v47 = vmul.f32 %v513_v1, %v76_v36 }
  0x4a   :  { %464 = vst [vmem:[%s1102_s4 + $0x1a0] sm:$0xff] %v400_v40  ;;  %v402_v46 = vsel %vm273_vm6, %v208_v29, %v338_v39  ;;  %v145_v48 = vmul.f32 %v513_v1, %v77_v37  ;;  %v403_v52 = vsel %vm274_vm7, %v209_v31, %v339_v41  ;;  %vm275_vm8 = vcmp.ge.f32.partialorder %v210_v42, 0.0 }
  0x4b   :  { %465 = vst [vmem:[%s1102_s4 + $0x1a8] sm:$0xff] %v401_v45  ;;  %v340_v53 = vmul.f32 %v537_v9, %v210_v42  ;;  %vm276_vm9 = vcmp.ge.f32.partialorder %v211_v43, 0.0  ;;  %v341_v54 = vmul.f32 %v537_v9, %v211_v43  ;;  %v212_v55 = vadd.f32 %v518_v2, %v144_v47 }
  0x4c   :  { %466 = vst [vmem:[%s1102_s4 + $0x1b0] sm:$0xff] %v402_v46  ;;  %v213_v56 = vadd.f32 %v518_v2, %v145_v48  ;;  %v146_v57 = vmul.f32 %v513_v1, %v78_v44  ;;  %v147_v59 = vmul.f32 %v513_v1, %v79_v49  ;;  %v148_v60 = vmul.f32 %v513_v1, %v80_v50 }
  0x4d   :  { %467 = vst [vmem:[%s1102_s4 + $0x1b8] sm:$0xff] %v403_v52  ;;  %v404_v58 = vsel %vm275_vm8, %v210_v42, %v340_v53  ;;  %v149_v61 = vmul.f32 %v513_v1, %v81_v51  ;;  %v405_v62 = vsel %vm276_vm9, %v211_v43, %v341_v54  ;;  %vm277_vm10 = vcmp.ge.f32.partialorder %v212_v55, 0.0 }
  0x4e   :  { %468 = vst [vmem:[%s1102_s4 + $0x1c0] sm:$0xff] %v404_v58  ;;  %v342_v63 = vmul.f32 %v537_v9, %v212_v55  ;;  %vm278_vm11 = vcmp.ge.f32.partialorder %v213_v56, 0.0  ;;  %v343_v0 = vmul.f32 %v537_v9, %v213_v56  ;;  %v214_v3 = vadd.f32 %v518_v2, %v146_v57 }
  0x4f   :  { %469 = vst [vmem:[%s1102_s4 + $0x1c8] sm:$0xff] %v405_v62  ;;  %v215_v4 = vadd.f32 %v518_v2, %v147_v59  ;;  %v216_v1 = vadd.f32 %v518_v2, %v148_v60  ;;  %v217_v6 = vadd.f32 %v518_v2, %v149_v61 }
  0x50   :  { %v406_v5 = vsel %vm277_vm10, %v212_v55, %v342_v63  ;;  %v407_v7 = vsel %vm278_vm11, %v213_v56, %v343_v0  ;;  %vm279_vm12 = vcmp.ge.f32.partialorder %v214_v3, 0.0  ;;  %v344_v8 = vmul.f32 %v537_v9, %v214_v3 }
  0x51   :  { %470 = vst [vmem:[%s1102_s4 + $0x1d0] sm:$0xff] %v406_v5  ;;  %vm280_vm13 = vcmp.ge.f32.partialorder %v215_v4, 0.0  ;;  %v345_v10 = vmul.f32 %v537_v9, %v215_v4  ;;  %vm281_vm14 = vcmp.ge.f32.partialorder %v216_v1, 0.0  ;;  %v346_v11 = vmul.f32 %v537_v9, %v216_v1 }
  0x52   :  { %471 = vst [vmem:[%s1102_s4 + $0x1d8] sm:$0xff] %v407_v7  ;;  %vm282_vm15 = vcmp.ge.f32.partialorder %v217_v6, 0.0  ;;  %v408_v2 = vsel %vm279_vm12, %v214_v3, %v344_v8  ;;  %v347_v12 = vmul.f32 %v537_v9, %v217_v6 }
  0x53   :  { %472 = vst [vmem:[%s1102_s4 + $0x1e0] sm:$0xff] %v408_v2  ;;  %v409_v13 = vsel %vm280_vm13, %v215_v4, %v345_v10  ;;  %v410_v14 = vsel %vm281_vm14, %v216_v1, %v346_v11 }
  0x54   :  { %473 = vst [vmem:[%s1102_s4 + $0x1e8] sm:$0xff] %v409_v13  ;;  %v411_v15 = vsel %vm282_vm15, %v217_v6, %v347_v12 }
  0x55   :  { %474 = vst [vmem:[%s1102_s4 + $0x1f0] sm:$0xff] %v410_v14 }
  0x56   :  { %475 = vst [vmem:[%s1102_s4 + $0x1f8] sm:$0xff] %v411_v15 }

// kernel: binary_conv2d.2
= control target key start
LH: loop header
LB: loop body
LE: loop exit
PB: predicated region body
PF: predicated region fallthrough
CT: control target
= control target key end

     0   :  { %s815_s15 = smov 0   ;;  %s1073_s0 = inlined_call_operand.vmem [shape: f32[512,36], index: 0, kind: input, shape index: {}]   ;;  %s1074_s1 = inlined_call_operand.vmem [shape: f32[36,128], index: 1, kind: input, shape index: {}]   ;;  %s1075_s2 = inlined_call_operand.vmem [shape: f32[512,128], index: 2, kind: output, shape index: {0}]   ;;  %s1076_s3 = inlined_call_operand.vmem [shape: f32[2,1,128], index: 3, kind: output, shape index: {1}]   ;;  %s1077_s4 = inlined_call_operand.vmem [shape: f32[2,1,128], index: 4, kind: output, shape index: {2}]  }
   0x1 LB: > { %s821_s16 = sadd.s32 4294967295, %s788_s15   ;;  %p719_p0 = scmp.ge.s32.totalorder %s788_s15, 1  ;;  %s788_s15 = sphi %s815_s15, %s15_s15  }
   0x2   : > { %p168_p1 = scmp.lt.s32.totalorder %s788_s15, 3 }
   0x4   : > { %p169_p2 = pnand %p719_p0, %p168_p1 }
   0x5   : > { %s720_s21 = sshll.u32 (!%p169_p2), %s821_s16, 5  ;;  %p212_p4 = scmp.lt.s32.totalorder (!%p169_p2), %s821_s16, 1 }
   0x6   : > { %172 = sbr.rel (%p169_p2) target bundleno = 268 (0x10c), region = 28  ;;  %p201_p3 = scmp.lt.s32.totalorder (!%p169_p2), %s720_s21, 63 }
   0xb   : > { %v254_v0 = vld [vmem:[%s1074_s1 + $0x20] sm:$0xf]  ;;  %vm352_vm0 = vcmask 1043456   ;;  %v253_v1 = vld [vmem:[%s1074_s1 + $0x18] sm:$0xff]  ;;  %v252_v2 = vld [vmem:[%s1074_s1 + $0x10] sm:$0xff]  ;;  %s1079_s21 = smov (!%p201_p3, %s720_s21), 63 }
   0xc   : > { %724 = vmatpush.msk.msra.mxu0 %vm352_vm0, %v254_v0  ;;  %759 = vmatpush.msk.msra.mxu1 %vm352_vm0, %v254_v0  ;;  %v251_v3 = vld [vmem:[%s1074_s1 + $0x8] sm:$0xff]  ;;  %s721_s26 = sshll.u32 %s1079_s21, 3  ;;  %v250_v4 = vld [vmem:[%s1074_s1] sm:$0xff]  ;;  %vm255_vm1 = vcmask 293888   ;;  %s1081_s16 = smov (!%p212_p4, %s821_s16), 1 }
   0xd   : > { %760 = vmatpush.msk.msra.mxu2 %vm352_vm0, %v254_v0  ;;  %761 = vmatpush.msk.msra.mxu3 %vm352_vm0, %v254_v0  ;;  %s849_s5 = scalar_lea.vmem %s1073_s0, %s721_s26  ;;  %s920_s8 = scalar_lea.vmem %s1075_s2, %s721_s26 }
   0xe   : > { %368 = vmatpush.msra.mxu0 %v253_v1  ;;  %762 = vmatpush.msra.mxu1 %v253_v1  ;;  %v218_v5 = vld [vmem:[%s849_s5] sm:$0xff]  ;;  %v219_v8 = vld [vmem:[%s849_s5 + $0x8] sm:$0xff]  ;;  %v220_v12 = vld [vmem:[%s849_s5 + $0x10] sm:$0xff]  ;;  %s214_s11 = scalar_lea.vmem %s1076_s3, %s1081_s16  ;;  %s217_s14 = scalar_lea.vmem %s1077_s4, %s1081_s16 }
   0xf   : > { %763 = vmatpush.msra.mxu2 %v253_v1  ;;  %764 = vmatpush.msra.mxu3 %v253_v1  ;;  %v226_v6 = vld [vmem:[%s849_s5 + $0x40] sm:$0xff]  ;;  %v227_v9 = vld [vmem:[%s849_s5 + $0x48] sm:$0xff]  ;;  %v228_v13 = vld [vmem:[%s849_s5 + $0x50] sm:$0xff] }
  0x10   : > { %369 = vmatpush.msra.mxu0 %v252_v2  ;;  %765 = vmatpush.msra.mxu1 %v252_v2  ;;  %v234_v7 = vld [vmem:[%s849_s5 + $0x80] sm:$0xff]  ;;  %v235_v10 = vld [vmem:[%s849_s5 + $0x88] sm:$0xff]  ;;  %v236_v14 = vld [vmem:[%s849_s5 + $0x90] sm:$0xff] }
  0x11   : > { %766 = vmatpush.msra.mxu2 %v252_v2  ;;  %767 = vmatpush.msra.mxu3 %v252_v2  ;;  %v242_v11 = vld [vmem:[%s849_s5 + $0xc0] sm:$0xff]  ;;  %v243_v15 = vld [vmem:[%s849_s5 + $0xc8] sm:$0xff]  ;;  %v221_v16 = vld [vmem:[%s849_s5 + $0x18] sm:$0xff] }
  0x12   : > { %370 = vmatpush.msra.mxu0 %v251_v3  ;;  %768 = vmatpush.msra.mxu1 %v251_v3  ;;  %v229_v17 = vld [vmem:[%s849_s5 + $0x58] sm:$0xff]  ;;  %v244_v19 = vld [vmem:[%s849_s5 + $0xd0] sm:$0xff]  ;;  %v222_v20 = vld [vmem:[%s849_s5 + $0x20] sm:$0xff] }
  0x13   : > { %769 = vmatpush.msra.mxu2 %v251_v3  ;;  %770 = vmatpush.msra.mxu3 %v251_v3  ;;  %v237_v18 = vld [vmem:[%s849_s5 + $0x98] sm:$0xff]  ;;  %v230_v21 = vld [vmem:[%s849_s5 + $0x60] sm:$0xff]  ;;  %v223_v24 = vld [vmem:[%s849_s5 + $0x28] sm:$0xff] }
  0x14   : > { %371 = vmatpush.msra.mxu0 %v250_v4  ;;  %771 = vmatpush.msra.mxu1 %v250_v4  ;;  %v245_v22 = vld [vmem:[%s849_s5 + $0xd8] sm:$0xff]  ;;  %v238_v23 = vld [vmem:[%s849_s5 + $0xa0] sm:$0xff]  ;;  %v231_v25 = vld [vmem:[%s849_s5 + $0x68] sm:$0xff] }
  0x15   : > { %725 = vmatmul.msk.f32.vlgmr.msra.gmra.mxu0 %vm255_vm1, %v218_v5  ;;  %733 = vmatmul.msk.f32.vlgmr.msra.gmra.mxu1 %vm255_vm1, %v226_v6  ;;  %v246_v26 = vld [vmem:[%s849_s5 + $0xe0] sm:$0xff]  ;;  %v239_v27 = vld [vmem:[%s849_s5 + $0xa8] sm:$0xff]  ;;  %v224_v28 = vld [vmem:[%s849_s5 + $0x30] sm:$0xff] }
  0x16   : > { %772 = vmatpush.msra.mxu2 %v250_v4  ;;  %773 = vmatpush.msra.mxu3 %v250_v4  ;;  %v232_v29 = vld [vmem:[%s849_s5 + $0x70] sm:$0xff]  ;;  %v247_v30 = vld [vmem:[%s849_s5 + $0xe8] sm:$0xff]  ;;  %v225_v32 = vld [vmem:[%s849_s5 + $0x38] sm:$0xff] }
  0x17   : > { %741 = vmatmul.msk.f32.vlgmr.msra.gmra.mxu2 %vm255_vm1, %v234_v7  ;;  %749 = vmatmul.msk.f32.vlgmr.msra.gmra.mxu3 %vm255_vm1, %v242_v11  ;;  %v240_v31 = vld [vmem:[%s849_s5 + $0xb0] sm:$0xff]  ;;  %v233_v33 = vld [vmem:[%s849_s5 + $0x78] sm:$0xff] }
  0x18   : > { %v248_v34 = vld [vmem:[%s849_s5 + $0xf0] sm:$0xff]  ;;  %v241_v35 = vld [vmem:[%s849_s5 + $0xb8] sm:$0xff] }
  0x19   : > { %v249_v36 = vld [vmem:[%s849_s5 + $0xf8] sm:$0xff] }
  0x1d   : > { %726 = vmatmul.msk.f32.gmra.mxu0 %vm255_vm1, %v219_v8  ;;  %734 = vmatmul.msk.f32.gmra.mxu1 %vm255_vm1, %v227_v9 }
  0x1f   : > { %742 = vmatmul.msk.f32.gmra.mxu2 %vm255_vm1, %v235_v10  ;;  %750 = vmatmul.msk.f32.gmra.mxu3 %vm255_vm1, %v243_v15 }
  0x25   : > { %727 = vmatmul.msk.f32.gmra.mxu0 %vm255_vm1, %v220_v12  ;;  %735 = vmatmul.msk.f32.gmra.mxu1 %vm255_vm1, %v228_v13 }
  0x27   : > { %743 = vmatmul.msk.f32.gmra.mxu2 %vm255_vm1, %v236_v14  ;;  %751 = vmatmul.msk.f32.gmra.mxu3 %vm255_vm1, %v244_v19 }
  0x2d   : > { %728 = vmatmul.msk.f32.gmra.mxu0 %vm255_vm1, %v221_v16  ;;  %736 = vmatmul.msk.f32.gmra.mxu1 %vm255_vm1, %v229_v17 }
  0x2f   : > { %744 = vmatmul.msk.f32.gmra.mxu2 %vm255_vm1, %v237_v18  ;;  %752 = vmatmul.msk.f32.gmra.mxu3 %vm255_vm1, %v245_v22 }
  0x35   : > { %729 = vmatmul.msk.f32.gmra.mxu0 %vm255_vm1, %v222_v20  ;;  %737 = vmatmul.msk.f32.gmra.mxu1 %vm255_vm1, %v230_v21 }
  0x37   : > { %745 = vmatmul.msk.f32.gmra.mxu2 %vm255_vm1, %v238_v23  ;;  %753 = vmatmul.msk.f32.gmra.mxu3 %vm255_vm1, %v246_v26 }
  0x3d   : > { %730 = vmatmul.msk.f32.gmra.mxu0 %vm255_vm1, %v223_v24  ;;  %738 = vmatmul.msk.f32.gmra.mxu1 %vm255_vm1, %v231_v25 }
  0x3f   : > { %746 = vmatmul.msk.f32.gmra.mxu2 %vm255_vm1, %v239_v27  ;;  %754 = vmatmul.msk.f32.gmra.mxu3 %vm255_vm1, %v247_v30 }
  0x45   : > { %731 = vmatmul.msk.f32.gmra.mxu0 %vm255_vm1, %v224_v28  ;;  %739 = vmatmul.msk.f32.gmra.mxu1 %vm255_vm1, %v232_v29 }
  0x47   : > { %747 = vmatmul.msk.f32.gmra.mxu2 %vm255_vm1, %v240_v31  ;;  %755 = vmatmul.msk.f32.gmra.mxu3 %vm255_vm1, %v248_v34 }
  0x4d   : > { %732 = vmatmul.msk.f32.gmra.mxu0 %vm255_vm1, %v225_v32  ;;  %740 = vmatmul.msk.f32.gmra.mxu1 %vm255_vm1, %v233_v33 }
  0x4f   : > { %748 = vmatmul.msk.f32.gmra.mxu2 %vm255_vm1, %v241_v35  ;;  %756 = vmatmul.msk.f32.gmra.mxu3 %vm255_vm1, %v249_v36 }
  0x92   : > { %v373_v37 = vpop.f32.mrf.mxu0  ;;  %v922_v38 = vpop.f32.mrf.mxu1 }
  0x93   : > { %469 = vst [vmem:[%s920_s8] sm:$0xff] %v373_v37  ;;  %v539_v59 = vmul.f32 %v373_v37, %v373_v37  ;;  %v547_v23 = vmul.f32 %v922_v38, %v922_v38 }
  0x94   : > { %477 = vst [vmem:[%s920_s8 + $0x40] sm:$0xff] %v922_v38 }
  0x9a   : > { %v376_v39 = vpop.f32.mrf.mxu0  ;;  %v927_v40 = vpop.f32.mrf.mxu1 }
  0x9b   : > { %470 = vst [vmem:[%s920_s8 + $0x8] sm:$0xff] %v376_v39  ;;  %v930_v41 = vpop.f32.mrf.mxu2  ;;  %v941_v45 = vpop.f32.mrf.mxu3  ;;  %v540_v58 = vmul.f32 %v376_v39, %v376_v39  ;;  %v501_v60 = vadd.f32 %v376_v39, %v373_v37  ;;  %v548_v26 = vmul.f32 %v927_v40, %v927_v40 }
  0x9c   : > { %478 = vst [vmem:[%s920_s8 + $0x48] sm:$0xff] %v927_v40 }
  0x9d   : > { %485 = vst [vmem:[%s920_s8 + $0x80] sm:$0xff] %v930_v41  ;;  %v571_v62 = vadd.f32 %v540_v58, %v539_v59 }
  0x9e   : > { %493 = vst [vmem:[%s920_s8 + $0xc0] sm:$0xff] %v941_v45 }
  0xa2   : > { %v379_v42 = vpop.f32.mrf.mxu0  ;;  %v936_v43 = vpop.f32.mrf.mxu1 }
  0xa3   : > { %471 = vst [vmem:[%s920_s8 + $0x10] sm:$0xff] %v379_v42  ;;  %v939_v44 = vpop.f32.mrf.mxu2  ;;  %v954_v49 = vpop.f32.mrf.mxu3  ;;  %v541_v61 = vmul.f32 %v379_v42, %v379_v42  ;;  %v502_v63 = vadd.f32 %v501_v60, %v379_v42  ;;  %v549_v29 = vmul.f32 %v936_v43, %v936_v43 }
  0xa4   : > { %479 = vst [vmem:[%s920_s8 + $0x50] sm:$0xff] %v936_v43 }
  0xa5   : > { %486 = vst [vmem:[%s920_s8 + $0x88] sm:$0xff] %v939_v44  ;;  %v572_v3 = vadd.f32 %v571_v62, %v541_v61  ;;  %v555_v61 = vmul.f32 %v930_v41, %v930_v41 }
  0xa6   : > { %494 = vst [vmem:[%s920_s8 + $0xc8] sm:$0xff] %v954_v49 }
  0xaa   : > { %v382_v46 = vpop.f32.mrf.mxu0  ;;  %v949_v47 = vpop.f32.mrf.mxu1 }
  0xab   : > { %472 = vst [vmem:[%s920_s8 + $0x18] sm:$0xff] %v382_v46  ;;  %v952_v48 = vpop.f32.mrf.mxu2  ;;  %v967_v53 = vpop.f32.mrf.mxu3  ;;  %v542_v0 = vmul.f32 %v382_v46, %v382_v46  ;;  %v503_v4 = vadd.f32 %v502_v63, %v382_v46  ;;  %v550_v32 = vmul.f32 %v949_v47, %v949_v47  ;;  %v556_v63 = vmul.f32 %v939_v44, %v939_v44 }
  0xac   : > { %480 = vst [vmem:[%s920_s8 + $0x58] sm:$0xff] %v949_v47 }
  0xad   : > { %487 = vst [vmem:[%s920_s8 + $0x90] sm:$0xff] %v952_v48  ;;  %v573_v8 = vadd.f32 %v572_v3, %v542_v0 }
  0xae   : > { %495 = vst [vmem:[%s920_s8 + $0xd0] sm:$0xff] %v967_v53 }
  0xb2   : > { %v385_v50 = vpop.f32.mrf.mxu0  ;;  %v962_v51 = vpop.f32.mrf.mxu1 }
  0xb3   : > { %473 = vst [vmem:[%s920_s8 + $0x20] sm:$0xff] %v385_v50  ;;  %v965_v52 = vpop.f32.mrf.mxu2  ;;  %v980_v57 = vpop.f32.mrf.mxu3  ;;  %v543_v5 = vmul.f32 %v385_v50, %v385_v50  ;;  %v504_v9 = vadd.f32 %v503_v4, %v385_v50  ;;  %v551_v37 = vmul.f32 %v962_v51, %v962_v51 }
  0xb4   : > { %481 = vst [vmem:[%s920_s8 + $0x60] sm:$0xff] %v962_v51  ;;  %v558_v4 = vmul.f32 %v965_v52, %v965_v52 }
  0xb5   : > { %488 = vst [vmem:[%s920_s8 + $0x98] sm:$0xff] %v965_v52  ;;  %v574_v11 = vadd.f32 %v573_v8, %v543_v5 }
  0xb6   : > { %496 = vst [vmem:[%s920_s8 + $0xd8] sm:$0xff] %v980_v57 }
  0xba   : > { %v388_v54 = vpop.f32.mrf.mxu0  ;;  %v975_v55 = vpop.f32.mrf.mxu1 }
  0xbb   : > { %474 = vst [vmem:[%s920_s8 + $0x28] sm:$0xff] %v388_v54  ;;  %v978_v56 = vpop.f32.mrf.mxu2  ;;  %v991_v7 = vpop.f32.mrf.mxu3  ;;  %v544_v10 = vmul.f32 %v388_v54, %v388_v54  ;;  %v505_v12 = vadd.f32 %v504_v9, %v388_v54  ;;  %v552_v42 = vmul.f32 %v975_v55, %v975_v55 }
  0xbc   : > { %482 = vst [vmem:[%s920_s8 + $0x68] sm:$0xff] %v975_v55 }
  0xbd   : > { %489 = vst [vmem:[%s920_s8 + $0xa0] sm:$0xff] %v978_v56  ;;  %v575_v14 = vadd.f32 %v574_v11, %v544_v10 }
  0xbe   : > { %497 = vst [vmem:[%s920_s8 + $0xe0] sm:$0xff] %v991_v7 }
  0xc2   : > { %v391_v1 = vpop.f32.mrf.mxu0  ;;  %v415_v2 = vpop.f32.mrf.mxu1 }
  0xc3   : > { %475 = vst [vmem:[%s920_s8 + $0x30] sm:$0xff] %v391_v1  ;;  %v989_v6 = vpop.f32.mrf.mxu2  ;;  %v545_v13 = vmul.f32 %v391_v1, %v391_v1  ;;  %v506_v15 = vadd.f32 %v505_v12, %v391_v1  ;;  %v999_v22 = vpop.f32.mrf.mxu3  ;;  %v557_v1 = vmul.f32 %v952_v48, %v952_v48 }
  0xc4   : > { %483 = vst [vmem:[%s920_s8 + $0x70] sm:$0xff] %v415_v2  ;;  %v560_v11 = vmul.f32 %v989_v6, %v989_v6 }
  0xc5   : > { %490 = vst [vmem:[%s920_s8 + $0xa8] sm:$0xff] %v989_v6  ;;  %v576_v18 = vadd.f32 %v575_v14, %v545_v13 }
  0xc6   : > { %498 = vst [vmem:[%s920_s8 + $0xe8] sm:$0xff] %v999_v22 }
  0xca   : > { %v394_v16 = vpop.f32.mrf.mxu0  ;;  %v418_v17 = vpop.f32.mrf.mxu1 }
  0xcb   : > { %476 = vst [vmem:[%s920_s8 + $0x38] sm:$0xff] %v394_v16  ;;  %v507_v19 = vadd.f32 %v506_v15, %v394_v16  ;;  %v546_v20 = vmul.f32 %v394_v16, %v394_v16  ;;  %v439_v21 = vpop.f32.mrf.mxu2  ;;  %v463_v36 = vpop.f32.mrf.mxu3  ;;  %v554_v54 = vmul.f32 %v418_v17, %v418_v17 }
  0xcc   : > { %484 = vst [vmem:[%s920_s8 + $0x78] sm:$0xff] %v418_v17  ;;  %v561_v14 = vmul.f32 %v439_v21, %v439_v21 }
  0xcd   : > { %v508_v24 = vadd.f32 %v507_v19, %v922_v38  ;;  %v577_v25 = vadd.f32 %v576_v18, %v546_v20  ;;  %491 = vst [vmem:[%s920_s8 + $0xb0] sm:$0xff] %v439_v21 }
  0xce   : > { %499 = vst [vmem:[%s920_s8 + $0xf0] sm:$0xff] %v463_v36 }
  0xcf   : > { %v509_v27 = vadd.f32 %v508_v24, %v927_v40  ;;  %v578_v28 = vadd.f32 %v577_v25, %v547_v23  ;;  %v566_v25 = vmul.f32 %v980_v57, %v980_v57 }
  0xd1   : > { %v510_v30 = vadd.f32 %v509_v27, %v936_v43  ;;  %v579_v31 = vadd.f32 %v578_v28, %v548_v26  ;;  %v567_v27 = vmul.f32 %v991_v7, %v991_v7 }
  0xd3   : > { %v580_v33 = vadd.f32 %v579_v31, %v549_v29  ;;  %v511_v34 = vadd.f32 %v510_v30, %v949_v47  ;;  %v442_v35 = vpop.f32.mrf.mxu2  ;;  %v553_v47 = vmul.f32 %v415_v2, %v415_v2  ;;  %v466_v60 = vpop.f32.mrf.mxu3 }
  0xd4   : > { %492 = vst [vmem:[%s920_s8 + $0xb8] sm:$0xff] %v442_v35  ;;  %v562_v15 = vmul.f32 %v442_v35, %v442_v35 }
  0xd5   : > { %v512_v38 = vadd.f32 %v511_v34, %v962_v51  ;;  %v581_v39 = vadd.f32 %v580_v33, %v550_v32  ;;  %500 = vst [vmem:[%s920_s8 + $0xf8] sm:$0xff] %v466_v60  ;;  %v569_v33 = vmul.f32 %v463_v36, %v463_v36  ;;  %v570_v34 = vmul.f32 %v466_v60, %v466_v60 }
  0xd7   : > { %v513_v40 = vadd.f32 %v512_v38, %v975_v55  ;;  %v582_v43 = vadd.f32 %v581_v39, %v551_v37 }
  0xd9   : > { %v583_v46 = vadd.f32 %v582_v43, %v552_v42  ;;  %v514_v50 = vadd.f32 %v513_v40, %v415_v2 }
  0xdb   : > { %v584_v58 = vadd.f32 %v583_v46, %v553_v47  ;;  %v515_v59 = vadd.f32 %v514_v50, %v418_v17 }
  0xdd   : > { %v516_v51 = vadd.f32 %v515_v59, %v930_v41  ;;  %v585_v62 = vadd.f32 %v584_v58, %v554_v54  ;;  %v559_v41 = vmul.f32 %v978_v56, %v978_v56 }
  0xdf   : > { %v517_v55 = vadd.f32 %v516_v51, %v939_v44  ;;  %v586_v0 = vadd.f32 %v585_v62, %v555_v61 }
  0xe1   : > { %v518_v2 = vadd.f32 %v517_v55, %v952_v48  ;;  %v587_v3 = vadd.f32 %v586_v0, %v556_v63 }
  0xe3   : > { %v588_v5 = vadd.f32 %v587_v3, %v557_v1  ;;  %v519_v8 = vadd.f32 %v518_v2, %v965_v52  ;;  %v563_v52 = vmul.f32 %v941_v45, %v941_v45 }
  0xe5   : > { %v520_v9 = vadd.f32 %v519_v8, %v978_v56  ;;  %v589_v10 = vadd.f32 %v588_v5, %v558_v4  ;;  %v564_v56 = vmul.f32 %v954_v49, %v954_v49 }
  0xe7   : > { %v521_v44 = vadd.f32 %v520_v9, %v989_v6  ;;  %v590_v12 = vadd.f32 %v589_v10, %v559_v41  ;;  %v565_v6 = vmul.f32 %v967_v53, %v967_v53 }
  0xe9   : > { %v591_v48 = vadd.f32 %v590_v12, %v560_v11  ;;  %v522_v13 = vadd.f32 %v521_v44, %v439_v21 }
  0xeb   : > { %v592_v16 = vadd.f32 %v591_v48, %v561_v14  ;;  %v523_v17 = vadd.f32 %v522_v13, %v442_v35 }
  0xed   : > { %v524_v18 = vadd.f32 %v523_v17, %v941_v45  ;;  %v593_v19 = vadd.f32 %v592_v16, %v562_v15 }
  0xef   : > { %v525_v20 = vadd.f32 %v524_v18, %v954_v49  ;;  %v594_v23 = vadd.f32 %v593_v19, %v563_v52 }
  0xf1   : > { %v526_v21 = vadd.f32 %v525_v20, %v967_v53  ;;  %v595_v24 = vadd.f32 %v594_v23, %v564_v56  ;;  %v568_v53 = vmul.f32 %v999_v22, %v999_v22 }
  0xf3   : > { %v596_v26 = vadd.f32 %v595_v24, %v565_v6  ;;  %v527_v45 = vadd.f32 %v526_v21, %v980_v57 }
  0xf5   : > { %v528_v28 = vadd.f32 %v527_v45, %v991_v7  ;;  %v597_v49 = vadd.f32 %v596_v26, %v566_v25 }
  0xf7   : > { %v529_v29 = vadd.f32 %v528_v28, %v999_v22  ;;  %v598_v30 = vadd.f32 %v597_v49, %v567_v27 }
  0xf9   : > { %v599_v31 = vadd.f32 %v598_v30, %v568_v53  ;;  %v530_v32 = vadd.f32 %v529_v29, %v463_v36 }
  0xfb   : > { %v600_v35 = vadd.f32 %v599_v31, %v569_v33  ;;  %v531_v37 = vadd.f32 %v530_v32, %v466_v60 }
  0xfd   : > { %v532_v57 = vrot.slane %v531_v37, 4  ;;  %v601_v38 = vadd.f32 %v600_v35, %v570_v34 }
  0xff   : > { %v533_v39 = vadd.f32 %v532_v57, %v531_v37  ;;  %v602_v40 = vrot.slane %v601_v38, 4 }
 0x101   : > { %v534_v7 = vrot.slane %v533_v39, 2  ;;  %v603_v42 = vadd.f32 %v602_v40, %v601_v38 }
 0x103   : > { %v535_v43 = vadd.f32 %v534_v7, %v533_v39  ;;  %v604_v46 = vrot.slane %v603_v42, 2 }
 0x105   : > { %v536_v50 = vrot.slane %v535_v43, 1  ;;  %v605_v47 = vadd.f32 %v604_v46, %v603_v42 }
 0x107   : > { %v537_v22 = vadd.f32 %v536_v50, %v535_v43  ;;  %v606_v36 = vrot.slane %v605_v47, 1 }
 0x109   : > { %538 = vst [vmem:[%s214_s11] sm:$0x1] %v537_v22  ;;  %v607_v54 = vadd.f32 %v606_v36, %v605_v47 }
 0x10b   : > { %608 = vst [vmem:[%s217_s14] sm:$0x1] %v607_v54 }
 0x10c PF: > { %s15_s15 = sadd.s32 1, %s788_s15  }
 0x10d   : > { %p12_p5 = scmp.ge.s32.totalorder %s15_s15, 4  }
 0x10f   :  { %14 = sbr.rel (!%p12_p5) target bundleno = 1 (0x1), region = 82 }

</bundles_post_ra>
